<compile_context>
chip_gen: v7x
topology: tpu7x:2x2x1
jax: 0.10.0
libtpu: 0.0.40
codegen_flags: <defaults>
</compile_context>

<pallas_src>
import jax
import jax.numpy as jnp
from jax.experimental import pallas as pl
from jax.experimental.pallas import tpu as pltpu


def _round_up(v, m):
    return ((v + m - 1) // m) * m


def model_forward(x, weight, bias, *, padding=4, max_tile_m=4096):
    """x: (N, C, H, W) f32; weight: (O, C, KH, KW); bias: (O,). Returns NCHW."""
    N, C, H, W = x.shape
    O, Cw, KH, KW = weight.shape
    assert C == Cw
    Hp, Wp = H + 2 * padding, W + 2 * padding
    Ho, Wo = Hp - KH + 1, Wp - KW + 1

    o_pad = _round_up(O, 8)

    # Flat-M layout: m = y * Wp + x  (note: Wp stride, not Wo), so every conv
    # tap (ky, kx) is the constant shift  m + ky*Wp + kx  of the flat image.
    # Positions with x >= Wo are computed as garbage and sliced off afterwards.
    m_out = Ho * Wp
    m_out_pad = _round_up(m_out, 128)
    tile_m = min(m_out_pad, max(128, _round_up(max_tile_m, 128)))
    num_m = pl.cdiv(m_out_pad, tile_m)
    m_out_pad = num_m * tile_m
    halo = _round_up((KH - 1) * Wp + (KW - 1), 128)   # extra lanes a tile reads
    m_in_pad = m_out_pad + halo

    # ---- host-side glue (pure layout; no 9x im2col blow-up) ----------------
    xp = jnp.pad(x, ((0, 0), (0, 0), (padding, padding), (padding, padding)))
    x_flat = xp.reshape(N, C, Hp * Wp)
    x_flat = jnp.pad(x_flat, ((0, 0), (0, 0), (0, m_in_pad - Hp * Wp)))

    # weights: (O, C, KH, KW) -> (KH*KW, O_pad, C), tap index k = ky*KW + kx
    w_r = jnp.pad(weight.transpose(2, 3, 0, 1).reshape(KH * KW, O, C),
                  ((0, 0), (0, o_pad - O), (0, 0)))
    # bias with the "- 3.0" folded in, lane-dense (8, 128) block
    b_r = jnp.pad(jnp.broadcast_to((bias - 3.0)[:, None], (O, 128)),
                  ((0, o_pad - O), (0, 0)))

    def kernel(x_ref, w_ref, b_ref, o_ref):
        # x_ref: (1, C, m_in_pad)    whole padded+flattened image (its block
        #                            index ignores the m axis -> fetched once
        #                            per image, resident across m-tiles)
        # w_ref: (KH*KW, o_pad, C)   resident conv taps (constant index_map)
        # b_ref: (o_pad, 128)        resident bias (-3.0 folded)
        # o_ref: (1, o_pad, tile_m)  lane-dense, NCHW-ordered output tile
        if num_m == 1:
            win = x_ref[0]                                   # (C, tile_m+halo)
        else:
            start = pl.multiple_of(pl.program_id(1) * tile_m, 128)
            win = x_ref[0, :, pl.ds(start, tile_m + halo)]
        win = jnp.maximum(win, 0.0)                          # fused ReLU (VPU)
        acc = jnp.zeros((o_pad, tile_m), jnp.float32)
        for k in range(KH * KW):                             # unrolled taps
            ky, kx = divmod(k, KW)
            s = ky * Wp + kx                                 # static lane shift
            acc = acc + jnp.dot(w_ref[k], win[:, s:s + tile_m],
                                preferred_element_type=jnp.float32)
        o_ref[0] = (acc + b_ref[...][:, :1]).astype(o_ref.dtype)

    cost = pl.CostEstimate(
        flops=2 * N * o_pad * C * KH * KW * m_out_pad,
        transcendentals=0,
        bytes_accessed=4 * (N * C * m_in_pad + KH * KW * o_pad * C
                            + o_pad * 128 + N * o_pad * m_out_pad),
    )

    out3 = pl.pallas_call(
        kernel,
        out_shape=jax.ShapeDtypeStruct((N, o_pad, m_out_pad), jnp.float32),
        grid_spec=pltpu.PrefetchScalarGridSpec(
            num_scalar_prefetch=0,
            grid=(N, num_m),
            in_specs=[
                pl.BlockSpec((1, C, m_in_pad), lambda n, i: (n, 0, 0)),
                pl.BlockSpec((KH * KW, o_pad, C), lambda n, i: (0, 0, 0)),
                pl.BlockSpec((o_pad, 128), lambda n, i: (0, 0)),
            ],
            out_specs=pl.BlockSpec((1, o_pad, tile_m), lambda n, i: (n, 0, i)),
        ),
        compiler_params=pltpu.CompilerParams(
            dimension_semantics=("parallel", "parallel"),
            vmem_limit_bytes=32 * 1024 * 1024,
        ),
        cost_estimate=cost,
    )(x_flat, w_r, b_r)

    # (N, O_pad, m_pad) is already NCHW-ordered: just slice off the padding.
    out = out3[:, :O, :Ho * Wp].reshape(N, O, Ho, Wp)[:, :, :, :Wo]
    return out


def _reference_forward(x, weight, bias, *, padding=4):
    """Pure-JAX reference for correctness checking."""
    xr = jnp.maximum(x, 0.0)
    out = jax.lax.conv_general_dilated(
        xr, weight, window_strides=(1, 1),
        padding=((padding, padding), (padding, padding)),
        dimension_numbers=("NCHW", "OIHW", "NCHW"))
    return out + bias.reshape(1, -1, 1, 1) - 3.0


if __name__ == "__main__":
    key = jax.random.PRNGKey(0)
    kx, kw, kb = jax.random.split(key, 3)

    N, C, H, W = 2, 3, 16, 16
    O, KH, KW = 6, 3, 3
    fan_in = C * KH * KW
    bound = 1.0 / (fan_in ** 0.5)

    x = jax.random.normal(kx, (N, C, H, W), dtype=jnp.float32)
    weight = jax.random.uniform(kw, (O, C, KH, KW), jnp.float32, -bound, bound)
    bias = jax.random.uniform(kb, (O,), jnp.float32, -bound, bound)

    fwd = jax.jit(lambda a, b, c: model_forward(a, b, c, padding=4))
    out = jax.block_until_ready(fwd(x, weight, bias))

    ref = _reference_forward(x, weight, bias, padding=4)
    assert out.shape == (N, O, H + 2 * 4 - KH + 1, W + 2 * 4 - KW + 1)
    assert jnp.allclose(out, ref, atol=1e-4, rtol=1e-4)

    print("KERNEL_OK")
</pallas_src>

<mosaic_0001>
module attributes {stable_mosaic.version = 11 : i64} {
  func.func @kernel(%arg0: i32, %arg1: i32, %arg2: memref<1x3x768xf32, #tpu.memory_space<vmem>>, %arg3: memref<9x8x3xf32, #tpu.memory_space<vmem>>, %arg4: memref<8x128xf32, #tpu.memory_space<vmem>>, %arg5: memref<1x8x640xf32, #tpu.memory_space<vmem>>) attributes {dimension_semantics = [#tpu.dimension_semantics<parallel>, #tpu.dimension_semantics<parallel>], iteration_bounds = array<i64: 2, 1>, scalar_prefetch = 0 : i64, scratch_operands = 0 : i64, tpu.core_type = #tpu.core_type<tc>, window_params = [{transform_indices = @transform_0, window_bounds = array<i64: 1, 3, 768>}, {pipeline_mode = #tpu.pipeline_mode<synchronous>, transform_indices = @transform_1, window_bounds = array<i64: 9, 8, 3>}, {pipeline_mode = #tpu.pipeline_mode<synchronous>, transform_indices = @transform_2, window_bounds = array<i64: 8, 128>}, {transform_indices = @transform_3, window_bounds = array<i64: 1, 8, 640>}]} {
    %c0 = arith.constant 0 : index
    %c0_0 = arith.constant 0 : index
    %c0_1 = arith.constant 0 : index
    %0 = vector.load %arg2[%c0, %c0_0, %c0_1] : memref<1x3x768xf32, #tpu.memory_space<vmem>>, vector<1x3x768xf32>
    %1 = vector.shape_cast %0 : vector<1x3x768xf32> to vector<3x768xf32>
    %cst = arith.constant 0.000000e+00 : f32
    %2 = vector.broadcast %cst : f32 to vector<3x768xf32>
    %3 = arith.maximumf %1, %2 : vector<3x768xf32>
    %cst_2 = arith.constant 0.000000e+00 : f32
    %4 = vector.broadcast %cst_2 : f32 to vector<8x640xf32>
    %c0_3 = arith.constant 0 : index
    %c0_4 = arith.constant 0 : index
    %c0_5 = arith.constant 0 : index
    %5 = vector.load %arg3[%c0_3, %c0_4, %c0_5] : memref<9x8x3xf32, #tpu.memory_space<vmem>>, vector<1x8x3xf32>
    %6 = vector.shape_cast %5 : vector<1x8x3xf32> to vector<8x3xf32>
    %7 = vector.extract_strided_slice %3 {offsets = [0, 0], sizes = [3, 640], strides = [1, 1]} : vector<3x768xf32> to vector<3x640xf32>
    %cst_6 = arith.constant dense<0.000000e+00> : vector<8x640xf32>
    %8 = tpu.matmul %6, %7, %cst_6 {dimension_numbers = #tpu.dot_dimension_numbers<[1], [0], [0], [1], [0, 0, 1, 1], [], []>} : vector<8x3xf32>, vector<3x640xf32>, vector<8x640xf32> -> vector<8x640xf32>
    %9 = arith.addf %4, %8 : vector<8x640xf32>
    %c1 = arith.constant 1 : index
    %c0_7 = arith.constant 0 : index
    %c0_8 = arith.constant 0 : index
    %10 = vector.load %arg3[%c1, %c0_7, %c0_8] : memref<9x8x3xf32, #tpu.memory_space<vmem>>, vector<1x8x3xf32>
    %11 = vector.shape_cast %10 : vector<1x8x3xf32> to vector<8x3xf32>
    %12 = vector.extract_strided_slice %3 {offsets = [0, 1], sizes = [3, 640], strides = [1, 1]} : vector<3x768xf32> to vector<3x640xf32>
    %cst_9 = arith.constant dense<0.000000e+00> : vector<8x640xf32>
    %13 = tpu.matmul %11, %12, %cst_9 {dimension_numbers = #tpu.dot_dimension_numbers<[1], [0], [0], [1], [0, 0, 1, 1], [], []>} : vector<8x3xf32>, vector<3x640xf32>, vector<8x640xf32> -> vector<8x640xf32>
    %14 = arith.addf %9, %13 : vector<8x640xf32>
    %c2 = arith.constant 2 : index
    %c0_10 = arith.constant 0 : index
    %c0_11 = arith.constant 0 : index
    %15 = vector.load %arg3[%c2, %c0_10, %c0_11] : memref<9x8x3xf32, #tpu.memory_space<vmem>>, vector<1x8x3xf32>
    %16 = vector.shape_cast %15 : vector<1x8x3xf32> to vector<8x3xf32>
    %17 = vector.extract_strided_slice %3 {offsets = [0, 2], sizes = [3, 640], strides = [1, 1]} : vector<3x768xf32> to vector<3x640xf32>
    %cst_12 = arith.constant dense<0.000000e+00> : vector<8x640xf32>
    %18 = tpu.matmul %16, %17, %cst_12 {dimension_numbers = #tpu.dot_dimension_numbers<[1], [0], [0], [1], [0, 0, 1, 1], [], []>} : vector<8x3xf32>, vector<3x640xf32>, vector<8x640xf32> -> vector<8x640xf32>
    %19 = arith.addf %14, %18 : vector<8x640xf32>
    %c3 = arith.constant 3 : index
    %c0_13 = arith.constant 0 : index
    %c0_14 = arith.constant 0 : index
    %20 = vector.load %arg3[%c3, %c0_13, %c0_14] : memref<9x8x3xf32, #tpu.memory_space<vmem>>, vector<1x8x3xf32>
    %21 = vector.shape_cast %20 : vector<1x8x3xf32> to vector<8x3xf32>
    %22 = vector.extract_strided_slice %3 {offsets = [0, 24], sizes = [3, 640], strides = [1, 1]} : vector<3x768xf32> to vector<3x640xf32>
    %cst_15 = arith.constant dense<0.000000e+00> : vector<8x640xf32>
    %23 = tpu.matmul %21, %22, %cst_15 {dimension_numbers = #tpu.dot_dimension_numbers<[1], [0], [0], [1], [0, 0, 1, 1], [], []>} : vector<8x3xf32>, vector<3x640xf32>, vector<8x640xf32> -> vector<8x640xf32>
    %24 = arith.addf %19, %23 : vector<8x640xf32>
    %c4 = arith.constant 4 : index
    %c0_16 = arith.constant 0 : index
    %c0_17 = arith.constant 0 : index
    %25 = vector.load %arg3[%c4, %c0_16, %c0_17] : memref<9x8x3xf32, #tpu.memory_space<vmem>>, vector<1x8x3xf32>
    %26 = vector.shape_cast %25 : vector<1x8x3xf32> to vector<8x3xf32>
    %27 = vector.extract_strided_slice %3 {offsets = [0, 25], sizes = [3, 640], strides = [1, 1]} : vector<3x768xf32> to vector<3x640xf32>
    %cst_18 = arith.constant dense<0.000000e+00> : vector<8x640xf32>
    %28 = tpu.matmul %26, %27, %cst_18 {dimension_numbers = #tpu.dot_dimension_numbers<[1], [0], [0], [1], [0, 0, 1, 1], [], []>} : vector<8x3xf32>, vector<3x640xf32>, vector<8x640xf32> -> vector<8x640xf32>
    %29 = arith.addf %24, %28 : vector<8x640xf32>
    %c5 = arith.constant 5 : index
    %c0_19 = arith.constant 0 : index
    %c0_20 = arith.constant 0 : index
    %30 = vector.load %arg3[%c5, %c0_19, %c0_20] : memref<9x8x3xf32, #tpu.memory_space<vmem>>, vector<1x8x3xf32>
    %31 = vector.shape_cast %30 : vector<1x8x3xf32> to vector<8x3xf32>
    %32 = vector.extract_strided_slice %3 {offsets = [0, 26], sizes = [3, 640], strides = [1, 1]} : vector<3x768xf32> to vector<3x640xf32>
    %cst_21 = arith.constant dense<0.000000e+00> : vector<8x640xf32>
    %33 = tpu.matmul %31, %32, %cst_21 {dimension_numbers = #tpu.dot_dimension_numbers<[1], [0], [0], [1], [0, 0, 1, 1], [], []>} : vector<8x3xf32>, vector<3x640xf32>, vector<8x640xf32> -> vector<8x640xf32>
    %34 = arith.addf %29, %33 : vector<8x640xf32>
    %c6 = arith.constant 6 : index
    %c0_22 = arith.constant 0 : index
    %c0_23 = arith.constant 0 : index
    %35 = vector.load %arg3[%c6, %c0_22, %c0_23] : memref<9x8x3xf32, #tpu.memory_space<vmem>>, vector<1x8x3xf32>
    %36 = vector.shape_cast %35 : vector<1x8x3xf32> to vector<8x3xf32>
    %37 = vector.extract_strided_slice %3 {offsets = [0, 48], sizes = [3, 640], strides = [1, 1]} : vector<3x768xf32> to vector<3x640xf32>
    %cst_24 = arith.constant dense<0.000000e+00> : vector<8x640xf32>
    %38 = tpu.matmul %36, %37, %cst_24 {dimension_numbers = #tpu.dot_dimension_numbers<[1], [0], [0], [1], [0, 0, 1, 1], [], []>} : vector<8x3xf32>, vector<3x640xf32>, vector<8x640xf32> -> vector<8x640xf32>
    %39 = arith.addf %34, %38 : vector<8x640xf32>
    %c7 = arith.constant 7 : index
    %c0_25 = arith.constant 0 : index
    %c0_26 = arith.constant 0 : index
    %40 = vector.load %arg3[%c7, %c0_25, %c0_26] : memref<9x8x3xf32, #tpu.memory_space<vmem>>, vector<1x8x3xf32>
    %41 = vector.shape_cast %40 : vector<1x8x3xf32> to vector<8x3xf32>
    %42 = vector.extract_strided_slice %3 {offsets = [0, 49], sizes = [3, 640], strides = [1, 1]} : vector<3x768xf32> to vector<3x640xf32>
    %cst_27 = arith.constant dense<0.000000e+00> : vector<8x640xf32>
    %43 = tpu.matmul %41, %42, %cst_27 {dimension_numbers = #tpu.dot_dimension_numbers<[1], [0], [0], [1], [0, 0, 1, 1], [], []>} : vector<8x3xf32>, vector<3x640xf32>, vector<8x640xf32> -> vector<8x640xf32>
    %44 = arith.addf %39, %43 : vector<8x640xf32>
    %c8 = arith.constant 8 : index
    %c0_28 = arith.constant 0 : index
    %c0_29 = arith.constant 0 : index
    %45 = vector.load %arg3[%c8, %c0_28, %c0_29] : memref<9x8x3xf32, #tpu.memory_space<vmem>>, vector<1x8x3xf32>
    %46 = vector.shape_cast %45 : vector<1x8x3xf32> to vector<8x3xf32>
    %47 = vector.extract_strided_slice %3 {offsets = [0, 50], sizes = [3, 640], strides = [1, 1]} : vector<3x768xf32> to vector<3x640xf32>
    %cst_30 = arith.constant dense<0.000000e+00> : vector<8x640xf32>
    %48 = tpu.matmul %46, %47, %cst_30 {dimension_numbers = #tpu.dot_dimension_numbers<[1], [0], [0], [1], [0, 0, 1, 1], [], []>} : vector<8x3xf32>, vector<3x640xf32>, vector<8x640xf32> -> vector<8x640xf32>
    %49 = arith.addf %44, %48 : vector<8x640xf32>
    %c0_31 = arith.constant 0 : index
    %c0_32 = arith.constant 0 : index
    %50 = vector.load %arg4[%c0_31, %c0_32] : memref<8x128xf32, #tpu.memory_space<vmem>>, vector<8x128xf32>
    %51 = vector.extract_strided_slice %50 {offsets = [0, 0], sizes = [8, 1], strides = [1, 1]} : vector<8x128xf32> to vector<8x1xf32>
    %52 = vector.broadcast %51 : vector<8x1xf32> to vector<8x640xf32>
    %53 = arith.addf %49, %52 : vector<8x640xf32>
    %c0_33 = arith.constant 0 : index
    %c0_34 = arith.constant 0 : index
    %c0_35 = arith.constant 0 : index
    %54 = vector.load %arg5[%c0_33, %c0_34, %c0_35] : memref<1x8x640xf32, #tpu.memory_space<vmem>>, vector<1x8x640xf32>
    %55 = vector.shape_cast %54 : vector<1x8x640xf32> to vector<8x640xf32>
    %56 = vector.shape_cast %53 : vector<8x640xf32> to vector<1x8x640xf32>
    tpu.vector_store %arg5[%c0_33, %c0_34, %c0_35], %56 {strides = array<i32>} : memref<1x8x640xf32, #tpu.memory_space<vmem>>, vector<1x8x640xf32>,
    return
  }
  func.func @transform_0(%arg0: i32, %arg1: i32) -> (i32, i32, i32) {
    %c0_i32 = arith.constant 0 : i32
    %c0_i32_0 = arith.constant 0 : i32
    %c0_i32_1 = arith.constant 0 : i32
    return %arg0, %c0_i32, %c0_i32_0 : i32, i32, i32
  }
  func.func @transform_1(%arg0: i32, %arg1: i32) -> (i32, i32, i32) {
    %c0_i32 = arith.constant 0 : i32
    %c0_i32_0 = arith.constant 0 : i32
    %c0_i32_1 = arith.constant 0 : i32
    %c0_i32_2 = arith.constant 0 : i32
    return %c0_i32, %c0_i32_0, %c0_i32_1 : i32, i32, i32
  }
  func.func @transform_2(%arg0: i32, %arg1: i32) -> (i32, i32) {
    %c0_i32 = arith.constant 0 : i32
    %c0_i32_0 = arith.constant 0 : i32
    %c0_i32_1 = arith.constant 0 : i32
    return %c0_i32, %c0_i32_0 : i32, i32
  }
  func.func @transform_3(%arg0: i32, %arg1: i32) -> (i32, i32, i32) {
    %c0_i32 = arith.constant 0 : i32
    %c0_i32_0 = arith.constant 0 : i32
    return %arg0, %c0_i32, %arg1 : i32, i32, i32
  }
}

</mosaic_0001>

<bundles_post_ra>
// kernel: _lambda_.1
= control target key start
LH: loop header
LB: loop body
LE: loop exit
PB: predicated region body
PF: predicated region fallthrough
CT: control target
= control target key end

     0   :  { %s2803_s12 = smov 0   ;;  %s2805_s13 = smov 0   ;;  %s3088_s0 = inlined_call_operand.vmem [shape: f32[2,3,768], index: 0, kind: input, shape index: {}]   ;;  %s3089_s1 = inlined_call_operand.vmem [shape: f32[9,8,3], index: 1, kind: input, shape index: {}]   ;;  %s3090_s2 = inlined_call_operand.vmem [shape: f32[8,128], index: 2, kind: input, shape index: {}]   ;;  %s3091_s3 = inlined_call_operand.vmem [shape: f32[2,8,640], index: 3, kind: output, shape index: {}]  }
   0x1   :  { %s2807_s14 = smov 0  }
   0x2 LB: > { %s25_s15 = sadd.s32 1, %s2766_s13  ;;  %p2530_p0 = scmp.ge.s32.totalorder %s2770_s14, 1  ;;  %s2770_s14 = sphi %s2807_s14, %s13_s14   ;;  %s2766_s13 = sphi %s2805_s13, %s3093_s13   ;;  %s2762_s12 = sphi %s2803_s12, %s3092_s12  }
   0x3   : > { %p27_p1 = scmp.ge.s32.totalorder %s25_s15, 2  ;;  %p151_p2 = scmp.lt.s32.totalorder %s2770_s14, 3 }
   0x5   : > { %s3095_s15 = smov (%p27_p1, %s25_s15), 0  ;;  %p152_p3 = pnand %p2530_p0, %p151_p2 }
   0x6   : > { %p179_p4 = scmp.lt.s32.totalorder (!%p152_p3), %s2762_s12, 1  ;;  %v2772_v3 = vmov (!%p152_p3), 0.0   ;;  %s2773_s20 = smov (!%p152_p3), 127   ;;  %v2781_v10 = vmov (!%p152_p3), 0   ;;  %v2429_v11 = vld [vmem:[%s3090_s2] sm:$0xff] (!%p152_p3)  ;;  %vm221_vm0 = vcmask (!%p152_p3), 1039360  }
   0x7   : > { %155 = sbr.rel (%p152_p3) target bundleno = 447 (0x1bf), region = 32  ;;  %306 = vmatprep.mubr.f32.mxu0 (!%p152_p3), %v2772_v3  ;;  %377 = vmatprep.mubr.f32.mxu1 (!%p152_p3), %v2772_v3  ;;  %s2774_s21 = smov (!%p152_p3), 126   ;;  %vm231_vm1 = vcmask (!%p152_p3), 1042432   ;;  %vm227_vm2 = vcmask (!%p152_p3), 23552   ;;  %v2533_v22 = vld [vmem:[%s3089_s1 + $0x8] sm:$0xff] (!%p152_p3)  ;;  %vm2782_vm3 = vmmov (!%p152_p3), 0  }
   0x8   : > { %s2775_s22 = smov (!%p152_p3), 104   ;;  %s2776_s23 = smov (!%p152_p3), 103   ;;  %2747 = vset.pattern.permute.xlu0 (!%p152_p3), %v2781_v10  ;;  %vm693_vm4 = vcmask (!%p152_p3), 1031168   ;;  %v200_v29 = vld [vmem:[%s3089_s1] sm:$0xff] (!%p152_p3)  ;;  %v2550_v37 = vld [vmem:[%s3089_s1 + $0x10] sm:$0xff] (!%p152_p3)  ;;  %vm943_vm5 = vcmask (!%p152_p3), 850944  }
   0x9   : > { %s2777_s24 = smov (!%p152_p3), 102   ;;  %s2778_s25 = smov (!%p152_p3), 80   ;;  %v2559_v46 = vld [vmem:[%s3089_s1 + $0x18] sm:$0xff] (!%p152_p3)  ;;  %vm1193_vm6 = vcmask (!%p152_p3), 842752   ;;  %v2568_v55 = vld [vmem:[%s3089_s1 + $0x20] sm:$0xff] (!%p152_p3)  ;;  %vm1443_vm7 = vcmask (!%p152_p3), 834560  }
   0xa   : > { %s2779_s26 = smov (!%p152_p3), 79   ;;  %s2780_s27 = smov (!%p152_p3), 78   ;;  %vm1693_vm8 = vcmask (!%p152_p3), 654336   ;;  %vm1943_vm9 = vcmask (!%p152_p3), 646144   ;;  %vm2193_vm10 = vcmask (!%p152_p3), 637952  }
   0xe   : > { %s3097_s12 = smov (!%p179_p4, %s2762_s12), 1 }
   0xf   : > { %s2710_s16 = smul.u32 24, %s3097_s12 }
  0x11   : > { %s183_s19 = scalar_lea.vmem %s3088_s0, %s2710_s16 }
  0x12   : > { %v195_v0 = vld [vmem:[%s183_s19 + $0x8] sm:$0x77]  ;;  %v194_v1 = vld [vmem:[%s183_s19] sm:$0x77]  ;;  %v196_v2 = vld [vmem:[%s183_s19 + $0x10] sm:$0x77] }
  0x13   : > { %v2829_v4 = vmax.f32 %v195_v0, 0.0  ;;  %v2831_v5 = vmax.f32 %v194_v1, 0.0  ;;  %v2835_v6 = vmax.f32 %v196_v2, 0.0  ;;  %v2577_v2 = vld [vmem:[%s3089_s1 + $0x28] sm:$0xff] }
  0x15   : > { %213 = vrot.lane.b32.xlu0 %v2829_v4, %s2773_s20  ;;  %209 = vrot.lane.b32.xlu1 %v2831_v5, %s2773_s20  ;;  %v2841_v7 = vcombine.high %v2829_v4, %v2829_v4  ;;  %v2845_v8 = vcombine.high %v2831_v5, %v2831_v5  ;;  %v208_v9 = vcombine.high %v2835_v6, %v2835_v6 }
  0x19   : > { %217 = vrot.lane.b32.xlu0 %v2835_v6, %s2773_s20  ;;  %685 = vrot.lane.b32.xlu1 %v2829_v4, %s2774_s21 }
  0x1d   : > { %215 = vrot.lane.b32.xlu1 %v2841_v7, %s2773_s20  ;;  %211 = vrot.lane.b32.xlu0 %v2845_v8, %s2773_s20 }
  0x21   : > { %219 = vrot.lane.b32.xlu1 %v208_v9, %s2773_s20  ;;  %683 = vrot.lane.b32.xlu0 %v2845_v8, %s2774_s21 }
  0x25   : > { %687 = vrot.lane.b32.xlu1 %v2841_v7, %s2774_s21  ;;  %681 = vrot.lane.b32.xlu0 %v2831_v5, %s2774_s21 }
  0x29   : > { %691 = vrot.lane.b32.xlu1 %v208_v9, %s2774_s21  ;;  %689 = vrot.lane.b32.xlu0 %v2835_v6, %s2774_s21 }
  0x2d   : > { %935 = vrot.lane.b32.xlu1 %v2829_v4, %s2775_s22  ;;  %933 = vrot.lane.b32.xlu0 %v2845_v8, %s2775_s22 }
  0x31   : > { %937 = vrot.lane.b32.xlu1 %v2841_v7, %s2775_s22  ;;  %931 = vrot.lane.b32.xlu0 %v2831_v5, %s2775_s22 }
  0x35   : > { %1183 = vrot.lane.b32.xlu1 %v2845_v8, %s2776_s23  ;;  %939 = vrot.lane.b32.xlu0 %v2835_v6, %s2775_s22 }
  0x39   : > { %1181 = vrot.lane.b32.xlu1 %v2831_v5, %s2776_s23  ;;  %1185 = vrot.lane.b32.xlu0 %v2829_v4, %s2776_s23 }
  0x3d   : > { %1187 = vrot.lane.b32.xlu1 %v2841_v7, %s2776_s23  ;;  %941 = vrot.lane.b32.xlu0 %v208_v9, %s2775_s22 }
  0x41   : > { %1191 = vrot.lane.b32.xlu1 %v208_v9, %s2776_s23  ;;  %1189 = vrot.lane.b32.xlu0 %v2835_v6, %s2776_s23 }
  0x45   : > { %1435 = vrot.lane.b32.xlu1 %v2829_v4, %s2777_s24  ;;  %1433 = vrot.lane.b32.xlu0 %v2845_v8, %s2777_s24 }
  0x49   : > { %1437 = vrot.lane.b32.xlu1 %v2841_v7, %s2777_s24  ;;  %1431 = vrot.lane.b32.xlu0 %v2831_v5, %s2777_s24 }
  0x4d   : > { %1683 = vrot.lane.b32.xlu1 %v2845_v8, %s2778_s25  ;;  %1439 = vrot.lane.b32.xlu0 %v2835_v6, %s2777_s24 }
  0x51   : > { %1681 = vrot.lane.b32.xlu1 %v2831_v5, %s2778_s25  ;;  %1685 = vrot.lane.b32.xlu0 %v2829_v4, %s2778_s25 }
  0x55   : > { %1687 = vrot.lane.b32.xlu1 %v2841_v7, %s2778_s25  ;;  %1441 = vrot.lane.b32.xlu0 %v208_v9, %s2777_s24 }
  0x59   : > { %1691 = vrot.lane.b32.xlu1 %v208_v9, %s2778_s25  ;;  %1689 = vrot.lane.b32.xlu0 %v2835_v6, %s2778_s25  ;;  %s2711_s25 = smul.u32 40, %s3097_s12 }
  0x5b   : > { %s192_s28 = scalar_lea.vmem %s3091_s3, %s2711_s25 }
  0x5d   : > { %1935 = vrot.lane.b32.xlu1 %v2829_v4, %s2779_s26  ;;  %1933 = vrot.lane.b32.xlu0 %v2845_v8, %s2779_s26 }
  0x61   : > { %1937 = vrot.lane.b32.xlu1 %v2841_v7, %s2779_s26  ;;  %1931 = vrot.lane.b32.xlu0 %v2831_v5, %s2779_s26 }
  0x65   : > { %2183 = vrot.lane.b32.xlu1 %v2845_v8, %s2780_s27  ;;  %1939 = vrot.lane.b32.xlu0 %v2835_v6, %s2779_s26 }
  0x69   : > { %2181 = vrot.lane.b32.xlu1 %v2831_v5, %s2780_s27  ;;  %2185 = vrot.lane.b32.xlu0 %v2829_v4, %s2780_s27 }
  0x6d   : > { %2187 = vrot.lane.b32.xlu1 %v2841_v7, %s2780_s27  ;;  %1941 = vrot.lane.b32.xlu0 %v208_v9, %s2779_s26 }
  0x71   : > { %2191 = vrot.lane.b32.xlu1 %v208_v9, %s2780_s27  ;;  %2189 = vrot.lane.b32.xlu0 %v2835_v6, %s2780_s27 }
  0x75   : > { %2432 = vperm.xlu0 %2747, %v2429_v11  }
  0x87   : > { %v214_v12 = vpop.permute.xlu0 %213  ;;  %v210_v13 = vpop.permute.xlu1 %209 }
  0x8b   : > { %v218_v14 = vpop.permute.xlu0 %217  ;;  %v686_v15 = vpop.permute.xlu1 %685 }
  0x8f   : > { %v216_v16 = vpop.permute.xlu1 %215  ;;  %v212_v17 = vpop.permute.xlu0 %211 }
  0x90   : > { %v223_v18 = vsel %vm221_vm0, %v212_v17, %v214_v12  ;;  %v225_v19 = vsel %vm221_vm0, %v216_v16, %v218_v14  ;;  %v222_v20 = vsel %vm221_vm0, %v210_v13, %v212_v17  ;;  %v224_v21 = vsel %vm221_vm0, %v214_v12, %v216_v16  ;;  %v2586_v13 = vld [vmem:[%s3089_s1 + $0x30] sm:$0xff] }
  0x91   : > { %2534 = vmatprep.subr.msk.mxu0 %vm231_vm1, %v223_v18  ;;  %2537 = vmatprep.subr.msk.mxu1 %vm231_vm1, %v225_v19 }
  0x92   : > { %2535 = vmatpush1.msk.msra.mxu0 %vm231_vm1, %v222_v20  ;;  %2538 = vmatpush1.msk.msra.mxu1 %vm231_vm1, %v224_v21 }
  0x93   : > { %2539 = vmatmul.mubr.msk.f32.vlgmr.msra.gmra.mrb[0].mxu1 %vm227_vm2, %v2533_v22  ;;  %v220_v23 = vpop.permute.xlu1 %219  ;;  %2536 = vmatmul.mubr.msk.f32.vlgmr.msra.gmra.mrb[0].mxu0 %vm227_vm2, %v2533_v22  ;;  %v684_v24 = vpop.permute.xlu0 %683 }
  0x94   : > { %v226_v25 = vsel %vm221_vm0, %v218_v14, %v220_v23  ;;  %2633 = vmatprep.subr.mxu0 %v2772_v3  ;;  %2635 = vmatprep.mubr.msk.f32.mxu0 %vm2782_vm3, %v2772_v3  ;;  %v695_v28 = vsel %vm693_vm4, %v684_v24, %v686_v15 }
  0x95   : > { %2634 = vmatpush3.msk.msra.mxu0 %vm231_vm1, %v226_v25  ;;  %2545 = vmatprep.subr.msk.mxu1 %vm231_vm1, %v2841_v7 }
  0x96   : > { %2542 = vmatprep.subr.msk.mxu0 %vm231_vm1, %v2845_v8  ;;  %2546 = vmatpush1.msk.msra.mxu1 %vm231_vm1, %v2829_v4 }
  0x97   : > { %v688_v26 = vpop.permute.xlu1 %687  ;;  %2636 = vmatmul.mubr.msk.f32.vlgmr.msra.gmra.mrb[2].mxu0 %vm227_vm2, %v2533_v22  ;;  %v682_v27 = vpop.permute.xlu0 %681  ;;  %602 = vmatprep.mubr.f32.mxu1 %v2772_v3 }
  0x98   : > { %2543 = vmatpush1.msk.msra.mxu0 %vm231_vm1, %v2831_v5  ;;  %531 = vmatprep.mubr.f32.mxu0 %v2772_v3  ;;  %v694_v30 = vsel %vm693_vm4, %v682_v27, %v684_v24  ;;  %v696_v34 = vsel %vm693_vm4, %v686_v15, %v688_v26  ;;  %v2595_v27 = vld [vmem:[%s3089_s1 + $0x38] sm:$0xff] }
  0x99   : > { %2551 = vmatprep.subr.msk.mxu0 %vm231_vm1, %v695_v28  ;;  %2638 = vmatprep.subr.mxu1 %v2772_v3 }
  0x9b   : > { %2547 = vmatmul.mubr.msk.f32.vlgmr.msra.gmra.mrb[0].mxu1 %vm227_vm2, %v200_v29  ;;  %v692_v31 = vpop.permute.xlu1 %691  ;;  %2544 = vmatmul.mubr.msk.f32.vlgmr.msra.gmra.mrb[0].mxu0 %vm227_vm2, %v200_v29  ;;  %v690_v32 = vpop.permute.xlu0 %689 }
  0x9c   : > { %2552 = vmatpush1.msk.msra.mxu0 %vm231_vm1, %v694_v30  ;;  %v697_v33 = vsel %vm693_vm4, %v688_v26, %v690_v32  ;;  %2639 = vmatpush3.msk.msra.mxu1 %vm231_vm1, %v2835_v6  ;;  %v698_v38 = vsel %vm693_vm4, %v690_v32, %v692_v31 }
  0x9d   : > { %2554 = vmatprep.subr.msk.mxu1 %vm231_vm1, %v697_v33  ;;  %2640 = vmatprep.mubr.msk.f32.mxu1 %vm2782_vm3, %v2772_v3 }
  0x9e   : > { %776 = vmatprep.mubr.f32.mxu0 %v2772_v3  ;;  %2643 = vmatprep.subr.mxu0 %v2772_v3 }
  0x9f   : > { %2641 = vmatmul.mubr.msk.f32.vlgmr.msra.gmra.mrb[2].mxu1 %vm227_vm2, %v200_v29  ;;  %v936_v35 = vpop.permute.xlu1 %935  ;;  %v934_v36 = vpop.permute.xlu0 %933 }
  0xa0   : > { %2555 = vmatpush1.msk.msra.mxu1 %vm231_vm1, %v696_v34  ;;  %847 = vmatprep.mubr.f32.mxu1 %v2772_v3  ;;  %v945_v41 = vsel %vm943_vm5, %v934_v36, %v936_v35 }
  0xa3   : > { %v938_v39 = vpop.permute.xlu1 %937  ;;  %2553 = vmatmul.mubr.msk.f32.vlgmr.msra.gmra.mrb[0].mxu0 %vm227_vm2, %v2550_v37  ;;  %v932_v40 = vpop.permute.xlu0 %931  ;;  %2556 = vmatmul.mubr.msk.f32.vlgmr.msra.gmra.mrb[0].mxu1 %vm227_vm2, %v2550_v37 }
  0xa4   : > { %2644 = vmatpush3.msk.msra.mxu0 %vm231_vm1, %v698_v38  ;;  %2645 = vmatprep.mubr.msk.f32.mxu0 %vm2782_vm3, %v2772_v3  ;;  %v944_v42 = vsel %vm943_vm5, %v932_v40, %v934_v36  ;;  %v946_v47 = vsel %vm943_vm5, %v936_v35, %v938_v39 }
  0xa5   : > { %2560 = vmatprep.subr.msk.mxu0 %vm231_vm1, %v945_v41  ;;  %1097 = vmatprep.mubr.f32.mxu1 %v2772_v3 }
  0xa7   : > { %v1184_v43 = vpop.permute.xlu1 %1183  ;;  %2646 = vmatmul.mubr.msk.f32.vlgmr.msra.gmra.mrb[4].mxu0 %vm227_vm2, %v2550_v37  ;;  %v940_v44 = vpop.permute.xlu0 %939  ;;  %v2604_v37 = vld [vmem:[%s3089_s1 + $0x40] sm:$0xff] }
  0xa8   : > { %2561 = vmatpush1.msk.msra.mxu0 %vm231_vm1, %v944_v42  ;;  %v947_v45 = vsel %vm943_vm5, %v938_v39, %v940_v44  ;;  %1026 = vmatprep.mubr.f32.mxu0 %v2772_v3 }
  0xa9   : > { %2563 = vmatprep.subr.msk.mxu1 %vm231_vm1, %v947_v45 }
  0xaa   : > { %2564 = vmatpush1.msk.msra.mxu1 %vm231_vm1, %v946_v47 }
  0xab   : > { %v1182_v48 = vpop.permute.xlu1 %1181  ;;  %2562 = vmatmul.mubr.msk.f32.vlgmr.msra.gmra.mrb[0].mxu0 %vm227_vm2, %v2559_v46  ;;  %v1186_v49 = vpop.permute.xlu0 %1185  ;;  %2565 = vmatmul.mubr.msk.f32.vlgmr.msra.gmra.mrb[0].mxu1 %vm227_vm2, %v2559_v46 }
  0xac   : > { %v1194_v50 = vsel %vm1193_vm6, %v1182_v48, %v1184_v43  ;;  %v1195_v51 = vsel %vm1193_vm6, %v1184_v43, %v1186_v49  ;;  %2648 = vmatprep.subr.mxu1 %v2772_v3  ;;  %2650 = vmatprep.mubr.msk.f32.mxu1 %vm2782_vm3, %v2772_v3 }
  0xad   : > { %2569 = vmatprep.subr.msk.mxu0 %vm231_vm1, %v1195_v51  ;;  %1276 = vmatprep.mubr.f32.mxu0 %v2772_v3 }
  0xae   : > { %2570 = vmatpush1.msk.msra.mxu0 %vm231_vm1, %v1194_v50 }
  0xaf   : > { %v1188_v52 = vpop.permute.xlu1 %1187  ;;  %v942_v53 = vpop.permute.xlu0 %941  ;;  %2653 = vmatprep.subr.mxu0 %v2772_v3 }
  0xb0   : > { %v948_v54 = vsel %vm943_vm5, %v940_v44, %v942_v53  ;;  %v1196_v60 = vsel %vm1193_vm6, %v1186_v49, %v1188_v52 }
  0xb1   : > { %2649 = vmatpush3.msk.msra.mxu1 %vm231_vm1, %v948_v54 }
  0xb2   : > { %2651 = vmatmul.mubr.msk.f32.vlgmr.msra.gmra.mrb[4].mxu1 %vm227_vm2, %v2559_v46 }
  0xb3   : > { %v1192_v56 = vpop.permute.xlu1 %1191  ;;  %2571 = vmatmul.mubr.msk.f32.vlgmr.msra.gmra.mrb[0].mxu0 %vm227_vm2, %v2568_v55  ;;  %v1190_v57 = vpop.permute.xlu0 %1189  ;;  %1347 = vmatprep.mubr.f32.mxu1 %v2772_v3 }
  0xb4   : > { %v1197_v58 = vsel %vm1193_vm6, %v1188_v52, %v1190_v57  ;;  %v1198_v59 = vsel %vm1193_vm6, %v1190_v57, %v1192_v56  ;;  %2655 = vmatprep.mubr.msk.f32.mxu0 %vm2782_vm3, %v2772_v3 }
  0xb5   : > { %2572 = vmatprep.subr.msk.mxu1 %vm231_vm1, %v1197_v58  ;;  %2654 = vmatpush3.msk.msra.mxu0 %vm231_vm1, %v1198_v59 }
  0xb6   : > { %2573 = vmatpush1.msk.msra.mxu1 %vm231_vm1, %v1196_v60 }
  0xb7   : > { %v1436_v61 = vpop.permute.xlu1 %1435  ;;  %2656 = vmatmul.mubr.msk.f32.vlgmr.msra.gmra.mrb[6].mxu0 %vm227_vm2, %v2568_v55  ;;  %v1434_v62 = vpop.permute.xlu0 %1433  ;;  %2574 = vmatmul.mubr.msk.f32.vlgmr.msra.gmra.mrb[0].mxu1 %vm227_vm2, %v2568_v55 }
  0xb8   : > { %v1445_v63 = vsel %vm1443_vm7, %v1434_v62, %v1436_v61  ;;  %1526 = vmatprep.mubr.f32.mxu0 %v2772_v3  ;;  %1597 = vmatprep.mubr.f32.mxu1 %v2772_v3 }
  0xb9   : > { %2578 = vmatprep.subr.msk.mxu0 %vm231_vm1, %v1445_v63 }
  0xbb   : > { %v1438_v0 = vpop.permute.xlu1 %1437  ;;  %v1432_v1 = vpop.permute.xlu0 %1431 }
  0xbc   : > { %v1444_v4 = vsel %vm1443_vm7, %v1432_v1, %v1434_v62  ;;  %v1446_v8 = vsel %vm1443_vm7, %v1436_v61, %v1438_v0 }
  0xbd   : > { %2579 = vmatpush1.msk.msra.mxu0 %vm231_vm1, %v1444_v4 }
  0xbe   : > { %2580 = vmatmul.mubr.msk.f32.vlgmr.msra.gmra.mrb[0].mxu0 %vm227_vm2, %v2577_v2 }
  0xbf   : > { %v1684_v5 = vpop.permute.xlu1 %1683  ;;  %v1440_v6 = vpop.permute.xlu0 %1439  ;;  %1776 = vmatprep.mubr.f32.mxu0 %v2772_v3 }
  0xc0   : > { %v1447_v7 = vsel %vm1443_vm7, %v1438_v0, %v1440_v6 }
  0xc1   : > { %2581 = vmatprep.subr.msk.mxu1 %vm231_vm1, %v1447_v7 }
  0xc2   : > { %2582 = vmatpush1.msk.msra.mxu1 %vm231_vm1, %v1446_v8 }
  0xc3   : > { %v1682_v9 = vpop.permute.xlu1 %1681  ;;  %v1686_v10 = vpop.permute.xlu0 %1685  ;;  %2583 = vmatmul.mubr.msk.f32.vlgmr.msra.gmra.mrb[0].mxu1 %vm227_vm2, %v2577_v2  ;;  %2658 = vmatprep.subr.mxu1 %v2772_v3 }
  0xc4   : > { %v1694_v11 = vsel %vm1693_vm8, %v1682_v9, %v1684_v5  ;;  %v1695_v12 = vsel %vm1693_vm8, %v1684_v5, %v1686_v10  ;;  %2660 = vmatprep.mubr.msk.f32.mxu1 %vm2782_vm3, %v2772_v3 }
  0xc5   : > { %2587 = vmatprep.subr.msk.mxu0 %vm231_vm1, %v1695_v12 }
  0xc6   : > { %2588 = vmatpush1.msk.msra.mxu0 %vm231_vm1, %v1694_v11 }
  0xc7   : > { %v1688_v14 = vpop.permute.xlu1 %1687  ;;  %v1442_v15 = vpop.permute.xlu0 %1441  ;;  %2589 = vmatmul.mubr.msk.f32.vlgmr.msra.gmra.mrb[0].mxu0 %vm227_vm2, %v2586_v13  ;;  %2663 = vmatprep.subr.mxu0 %v2772_v3 }
  0xc8   : > { %v1448_v16 = vsel %vm1443_vm7, %v1440_v6, %v1442_v15  ;;  %2665 = vmatprep.mubr.msk.f32.mxu0 %vm2782_vm3, %v2772_v3  ;;  %v1696_v21 = vsel %vm1693_vm8, %v1686_v10, %v1688_v14 }
  0xc9   : > { %2659 = vmatpush3.msk.msra.mxu1 %vm231_vm1, %v1448_v16 }
  0xca   : > { %2661 = vmatmul.mubr.msk.f32.vlgmr.msra.gmra.mrb[6].mxu1 %vm227_vm2, %v2577_v2 }
  0xcb   : > { %v1692_v17 = vpop.permute.xlu1 %1691  ;;  %v1690_v18 = vpop.permute.xlu0 %1689  ;;  %1847 = vmatprep.mubr.f32.mxu1 %v2772_v3 }
  0xcc   : > { %v1697_v19 = vsel %vm1693_vm8, %v1688_v14, %v1690_v18  ;;  %v1698_v20 = vsel %vm1693_vm8, %v1690_v18, %v1692_v17 }
  0xcd   : > { %2590 = vmatprep.subr.msk.mxu1 %vm231_vm1, %v1697_v19  ;;  %2664 = vmatpush3.msk.msra.mxu0 %vm231_vm1, %v1698_v20 }
  0xce   : > { %2591 = vmatpush1.msk.msra.mxu1 %vm231_vm1, %v1696_v21  ;;  %2666 = vmatmul.mubr.msk.f32.vlgmr.msra.gmra.mrb[8].mxu0 %vm227_vm2, %v2586_v13 }
  0xcf   : > { %v1936_v22 = vpop.permute.xlu1 %1935  ;;  %v1934_v23 = vpop.permute.xlu0 %1933  ;;  %2592 = vmatmul.mubr.msk.f32.vlgmr.msra.gmra.mrb[0].mxu1 %vm227_vm2, %v2586_v13  ;;  %2026 = vmatprep.mubr.f32.mxu0 %v2772_v3 }
  0xd0   : > { %v1945_v24 = vsel %vm1943_vm9, %v1934_v23, %v1936_v22  ;;  %2097 = vmatprep.mubr.f32.mxu1 %v2772_v3 }
  0xd1   : > { %2596 = vmatprep.subr.msk.mxu0 %vm231_vm1, %v1945_v24 }
  0xd3   : > { %v1938_v25 = vpop.permute.xlu1 %1937  ;;  %v1932_v26 = vpop.permute.xlu0 %1931 }
  0xd4   : > { %v1944_v28 = vsel %vm1943_vm9, %v1932_v26, %v1934_v23  ;;  %v1946_v32 = vsel %vm1943_vm9, %v1936_v22, %v1938_v25 }
  0xd5   : > { %2597 = vmatpush1.msk.msra.mxu0 %vm231_vm1, %v1944_v28 }
  0xd6   : > { %2598 = vmatmul.mubr.msk.f32.vlgmr.msra.gmra.mrb[0].mxu0 %vm227_vm2, %v2595_v27 }
  0xd7   : > { %v2184_v29 = vpop.permute.xlu1 %2183  ;;  %v1940_v30 = vpop.permute.xlu0 %1939  ;;  %2276 = vmatprep.mubr.f32.mxu0 %v2772_v3 }
  0xd8   : > { %v1947_v31 = vsel %vm1943_vm9, %v1938_v25, %v1940_v30 }
  0xd9   : > { %2599 = vmatprep.subr.msk.mxu1 %vm231_vm1, %v1947_v31 }
  0xda   : > { %2600 = vmatpush1.msk.msra.mxu1 %vm231_vm1, %v1946_v32 }
  0xdb   : > { %v2182_v33 = vpop.permute.xlu1 %2181  ;;  %v2186_v34 = vpop.permute.xlu0 %2185  ;;  %2601 = vmatmul.mubr.msk.f32.vlgmr.msra.gmra.mrb[0].mxu1 %vm227_vm2, %v2595_v27  ;;  %2668 = vmatprep.subr.mxu1 %v2772_v3 }
  0xdc   : > { %v2194_v35 = vsel %vm2193_vm10, %v2182_v33, %v2184_v29  ;;  %v2195_v36 = vsel %vm2193_vm10, %v2184_v29, %v2186_v34  ;;  %2670 = vmatprep.mubr.msk.f32.mxu1 %vm2782_vm3, %v2772_v3 }
  0xdd   : > { %2605 = vmatprep.subr.msk.mxu0 %vm231_vm1, %v2195_v36 }
  0xde   : > { %2606 = vmatpush1.msk.msra.mxu0 %vm231_vm1, %v2194_v35 }
  0xdf   : > { %v2188_v38 = vpop.permute.xlu1 %2187  ;;  %2607 = vmatmul.mubr.msk.f32.vlgmr.msra.gmra.mrb[0].mxu0 %vm227_vm2, %v2604_v37  ;;  %v1942_v39 = vpop.permute.xlu0 %1941  ;;  %2673 = vmatprep.subr.mxu0 %v2772_v3 }
  0xe0   : > { %v1948_v40 = vsel %vm1943_vm9, %v1940_v30, %v1942_v39  ;;  %2675 = vmatprep.mubr.msk.f32.mxu0 %vm2782_vm3, %v2772_v3  ;;  %v2196_v45 = vsel %vm2193_vm10, %v2186_v34, %v2188_v38 }
  0xe1   : > { %2669 = vmatpush3.msk.msra.mxu1 %vm231_vm1, %v1948_v40 }
  0xe2   : > { %2671 = vmatmul.mubr.msk.f32.vlgmr.msra.gmra.mrb[8].mxu1 %vm227_vm2, %v2595_v27 }
  0xe3   : > { %v2192_v41 = vpop.permute.xlu1 %2191  ;;  %v2190_v42 = vpop.permute.xlu0 %2189  ;;  %2347 = vmatprep.mubr.f32.mxu1 %v2772_v3 }
  0xe4   : > { %v2197_v43 = vsel %vm2193_vm10, %v2188_v38, %v2190_v42  ;;  %v2198_v44 = vsel %vm2193_vm10, %v2190_v42, %v2192_v41 }
  0xe5   : > { %2608 = vmatprep.subr.msk.mxu1 %vm231_vm1, %v2197_v43  ;;  %2674 = vmatpush3.msk.msra.mxu0 %vm231_vm1, %v2198_v44 }
  0xe6   : > { %2609 = vmatpush1.msk.msra.mxu1 %vm231_vm1, %v2196_v45  ;;  %2676 = vmatmul.mubr.msk.f32.vlgmr.msra.gmra.mrb[10].mxu0 %vm227_vm2, %v2604_v37 }
  0xe7   : > { %2610 = vmatmul.mubr.msk.f32.vlgmr.msra.gmra.mrb[0].mxu1 %vm227_vm2, %v2604_v37 }
  0xf4   : > { %v2433_v1 = vpop.permute.xlu0 %2432 }
 0x16a   : > { %v450_v46 = vpop.f32.mrb[2].mxu0 }
 0x16b   : > { %v2637_v47 = vpop.f32.mrb[3].mxu0 }
 0x172   : > { %v675_v48 = vpop.f32.mrb[2].mxu1 }
 0x173   : > { %v676_v3 = vadd.f32 %v675_v48, %v450_v46  ;;  %v2642_v49 = vpop.f32.mrb[3].mxu1 }
 0x17a   : > { %v920_v50 = vpop.f32.mrb[4].mxu0 }
 0x17b   : > { %v928_v51 = vadd.f32 %v920_v50, %v676_v3  ;;  %v2647_v52 = vpop.f32.mrb[5].mxu0 }
 0x185   : > { %v1170_v53 = vpop.f32.mrb[4].mxu1 }
 0x186   : > { %v1178_v54 = vadd.f32 %v1170_v53, %v928_v51  ;;  %v2652_v55 = vpop.f32.mrb[5].mxu1 }
 0x18a   : > { %v1420_v56 = vpop.f32.mrb[6].mxu0 }
 0x18b   : > { %v1428_v57 = vadd.f32 %v1420_v56, %v1178_v54  ;;  %v2657_v58 = vpop.f32.mrb[7].mxu0 }
 0x19d   : > { %v1670_v59 = vpop.f32.mrb[6].mxu1 }
 0x19e   : > { %v1678_v60 = vadd.f32 %v1670_v59, %v1428_v57  ;;  %v2662_v61 = vpop.f32.mrb[7].mxu1 }
 0x1a1   : > { %v1920_v62 = vpop.f32.mrb[8].mxu0 }
 0x1a2   : > { %v1928_v63 = vadd.f32 %v1920_v62, %v1678_v60  ;;  %v2667_v0 = vpop.f32.mrb[9].mxu0 }
 0x1b2   : > { %v2278_v2 = vpop.f32.mrb[0].mxu0 }
 0x1b3   : > { %v2435_v4 = vadd.f32 %v2433_v1, %v2278_v2  ;;  %v2280_v5 = vpop.f32.mrb[1].mxu0 }
 0x1b4   : > { %v2436_v6 = vadd.f32 %v2433_v1, %v2280_v5 }
 0x1b5   : > { %2440 = vst [vmem:[%s192_s28] sm:$0xff] %v2435_v4  ;;  %v2170_v7 = vpop.f32.mrb[8].mxu1 }
 0x1b6   : > { %2441 = vst [vmem:[%s192_s28 + $0x8] sm:$0xff] %v2436_v6  ;;  %v2178_v8 = vadd.f32 %v2170_v7, %v1928_v63  ;;  %v2672_v9 = vpop.f32.mrb[9].mxu1 }
 0x1b9   : > { %v2420_v10 = vpop.f32.mrb[10].mxu0 }
 0x1ba   : > { %v2428_v11 = vadd.f32 %v2420_v10, %v2178_v8  ;;  %v2349_v12 = vpop.f32.mrb[0].mxu1  ;;  %v2677_v13 = vpop.f32.mrb[11].mxu0 }
 0x1bb   : > { %v2437_v14 = vadd.f32 %v2433_v1, %v2349_v12  ;;  %v2351_v15 = vpop.f32.mrb[1].mxu1 }
 0x1bc   : > { %v2439_v16 = vadd.f32 %v2433_v1, %v2428_v11  ;;  %v2438_v17 = vadd.f32 %v2433_v1, %v2351_v15 }
 0x1bd   : > { %2442 = vst [vmem:[%s192_s28 + $0x10] sm:$0xff] %v2437_v14 }
 0x1be   : > { %2444 = vst [vmem:[%s192_s28 + $0x20] sm:$0xff] %v2439_v16  ;;  %2443 = vst [vmem:[%s192_s28 + $0x18] sm:$0xff] %v2438_v17 }
 0x1bf PF: > { %s13_s14 = sadd.s32 1, %s2770_s14   ;;  %s3092_s12 = smov %s2766_s13 }
 0x1c0   : > { %p10_p5 = scmp.ge.s32.totalorder %s13_s14, 4   ;;  %s3093_s13 = smov %s3095_s15 }
 0x1c2   :  { %12 = sbr.rel (!%p10_p5) target bundleno = 2 (0x2), region = 70 }

</bundles_post_ra>
